<compile_context>
chip_gen: v5e
topology: v5e:2x2
jax: 0.10.0
libtpu: 0.0.40
codegen_flags: <defaults>
</compile_context>

<pallas_src>
import jax
import jax.numpy as jnp
from jax.experimental import pallas as pl
from jax.experimental.pallas import tpu as pltpu


def _round_up(n, m):
    return (n + m - 1) // m * m


def logreg_kernel(x_ref, w_ref, b_ref, o_ref):
    # x_ref: (F, TB) feature-major tile (features on sublanes, batch on lanes)
    # w_ref: (F, 1)  weights, resident across all grid steps
    # b_ref: (1, 1)  bias scalar in SMEM
    # o_ref: (1, TB) lane-dense output tile
    x = x_ref[...]
    w = w_ref[...]
    b = b_ref[0, 0]
    # VPU broadcast-multiply + sublane (XLU) reduce; MXU skipped for K=26, N=1.
    z = jnp.sum(x * w, axis=0, keepdims=True) + b          # (1, TB), f32
    # sigmoid(z) = 0.5 * (tanh(z/2) + 1): one EUP tanh, no reciprocal on the VPU.
    o_ref[...] = 0.5 * (jnp.tanh(0.5 * z) + 1.0)


def logistic_regression(x, w, b, *, block_b=8192):
    """x: (B, 26) f32, w: (1, 26) f32, b: (1,) f32 -> (B, 1) f32."""
    B, F = x.shape
    assert block_b % 128 == 0

    # Batch tile: whole (unpadded) batch if it is small, else a 128-multiple tile.
    # block_b=8192 keeps the double-buffered x tile at ~1 MiB of VMEM after padding,
    # well under the default scoped VMEM limits on v5e/v6e/v7x.
    if B <= block_b:
        TB, Bp = B, B
    else:
        TB = block_b
        Bp = _round_up(B, TB)

    # Layout plumbing to a feature-major, lane-dense presentation.  (At very large B,
    # store activations feature-major upstream to avoid this extra transpose pass.)
    xt = x.astype(jnp.float32).T                          # (F, B)
    if Bp != B:
        xt = jnp.pad(xt, ((0, 0), (0, Bp - B)))           # padded cols -> sigmoid(b), sliced off
    wt = jnp.asarray(w, jnp.float32).reshape(F, 1)        # (F, 1)
    b2 = jnp.asarray(b, jnp.float32).reshape(1, 1)        # (1, 1) -> SMEM scalar

    nb = Bp // TB
    out = pl.pallas_call(
        logreg_kernel,
        out_shape=jax.ShapeDtypeStruct((1, Bp), jnp.float32),
        grid_spec=pltpu.PrefetchScalarGridSpec(
            num_scalar_prefetch=0,
            grid=(nb,),
            in_specs=[
                pl.BlockSpec((F, TB), lambda i: (0, i)),              # x: streamed tiles
                pl.BlockSpec((F, 1), lambda i: (0, 0)),               # w: resident
                pl.BlockSpec(memory_space=pltpu.MemorySpace.SMEM),    # bias scalar
            ],
            out_specs=pl.BlockSpec((1, TB), lambda i: (0, i)),        # lane-dense output
        ),
        compiler_params=pltpu.CompilerParams(
            dimension_semantics=("parallel",)),
    )(xt, wt, b2)

    return out.reshape(Bp, 1)[:B]                         # (B, 1), batch-major like PyTorch


if __name__ == "__main__":
    key = jax.random.PRNGKey(0)
    kx, kw, kb = jax.random.split(key, 3)

    F = 26
    # Deterministic parameter init mimicking nn.Linear default:
    # U(-1/sqrt(in_features), 1/sqrt(in_features)).
    bound = 1.0 / jnp.sqrt(jnp.float32(F))
    w = jax.random.uniform(kw, (1, F), dtype=jnp.float32, minval=-bound, maxval=bound)
    b = jax.random.uniform(kb, (1,), dtype=jnp.float32, minval=-bound, maxval=bound)

    # Small single-tile case (same (B, 26) layout the PyTorch module expects).
    B = 8
    x = jax.random.normal(kx, (B, F), dtype=jnp.float32)
    out = jax.block_until_ready(logistic_regression(x, w, b))
    ref = jax.nn.sigmoid(x @ w.T + b)
    assert out.shape == (B, 1)
    assert jnp.allclose(out, ref, atol=1e-5, rtol=1e-5)

    # Multi-tile case exercising batch tiling + padding (small block size for the test).
    B2 = 300
    x2 = jax.random.normal(kx, (B2, F), dtype=jnp.float32)
    out2 = jax.block_until_ready(logistic_regression(x2, w, b, block_b=128))
    ref2 = jax.nn.sigmoid(x2 @ w.T + b)
    assert out2.shape == (B2, 1)
    assert jnp.allclose(out2, ref2, atol=1e-5, rtol=1e-5)

    print("KERNEL_OK")
</pallas_src>

<mosaic_0001>
module attributes {stable_mosaic.version = 11 : i64} {
  func.func @logreg_kernel(%arg0: i32, %arg1: memref<26x8xf32, #tpu.memory_space<vmem>>, %arg2: memref<26x1xf32, #tpu.memory_space<vmem>>, %arg3: memref<1x1xf32, #tpu.memory_space<smem>>, %arg4: memref<1x8xf32, #tpu.memory_space<vmem>>) attributes {dimension_semantics = [#tpu.dimension_semantics<parallel>], iteration_bounds = array<i64: 1>, scalar_prefetch = 0 : i64, scratch_operands = 0 : i64, tpu.core_type = #tpu.core_type<tc>, window_params = [{transform_indices = @transform_0, window_bounds = array<i64: 26, 8>}, {pipeline_mode = #tpu.pipeline_mode<synchronous>, transform_indices = @transform_1, window_bounds = array<i64: 26, 1>}, {transform_indices = @transform_2, window_bounds = array<i64: 1, 1>}, {transform_indices = @transform_3, window_bounds = array<i64: 1, 8>}]} {
    %c0 = arith.constant 0 : index
    %c0_0 = arith.constant 0 : index
    %0 = vector.load %arg1[%c0, %c0_0] : memref<26x8xf32, #tpu.memory_space<vmem>>, vector<26x8xf32>
    %c0_1 = arith.constant 0 : index
    %c0_2 = arith.constant 0 : index
    %1 = vector.load %arg2[%c0_1, %c0_2] : memref<26x1xf32, #tpu.memory_space<vmem>>, vector<26x1xf32>
    %c0_3 = arith.constant 0 : index
    %c0_4 = arith.constant 0 : index
    %2 = memref.load %arg3[%c0_3, %c0_4] : memref<1x1xf32, #tpu.memory_space<smem>>
    %3 = vector.broadcast %1 : vector<26x1xf32> to vector<26x8xf32>
    %4 = arith.mulf %0, %3 : vector<26x8xf32>
    %cst = arith.constant dense<0.000000e+00> : vector<8xf32>
    %5 = vector.multi_reduction <add>, %4, %cst [0] : vector<26x8xf32> to vector<8xf32>
    %6 = vector.shape_cast %5 : vector<8xf32> to vector<1x8xf32>
    %7 = vector.broadcast %2 : f32 to vector<1x8xf32>
    %8 = arith.addf %6, %7 : vector<1x8xf32>
    %cst_5 = arith.constant 5.000000e-01 : f32
    %9 = vector.broadcast %cst_5 : f32 to vector<1x8xf32>
    %10 = arith.mulf %9, %8 : vector<1x8xf32>
    %11 = math.tanh %10 : vector<1x8xf32>
    %cst_6 = arith.constant 1.000000e+00 : f32
    %12 = vector.broadcast %cst_6 : f32 to vector<1x8xf32>
    %13 = arith.addf %11, %12 : vector<1x8xf32>
    %cst_7 = arith.constant 5.000000e-01 : f32
    %14 = vector.broadcast %cst_7 : f32 to vector<1x8xf32>
    %15 = arith.mulf %14, %13 : vector<1x8xf32>
    %c0_8 = arith.constant 0 : index
    %c0_9 = arith.constant 0 : index
    %16 = vector.load %arg4[%c0_8, %c0_9] : memref<1x8xf32, #tpu.memory_space<vmem>>, vector<1x8xf32>
    tpu.vector_store %arg4[%c0_8, %c0_9], %15 {strides = array<i32>} : memref<1x8xf32, #tpu.memory_space<vmem>>, vector<1x8xf32>,
    return
  }
  func.func @transform_0(%arg0: i32) -> (i32, i32) {
    %c0_i32 = arith.constant 0 : i32
    %c0_i32_0 = arith.constant 0 : i32
    return %c0_i32, %arg0 : i32, i32
  }
  func.func @transform_1(%arg0: i32) -> (i32, i32) {
    %c0_i32 = arith.constant 0 : i32
    %c0_i32_0 = arith.constant 0 : i32
    %c0_i32_1 = arith.constant 0 : i32
    return %c0_i32, %c0_i32_0 : i32, i32
  }
  func.func @transform_2(%arg0: i32) -> (i32, i32) {
    %c0_i32 = arith.constant 0 : i32
    %c0_i32_0 = arith.constant 0 : i32
    %c0_i32_1 = arith.constant 0 : i32
    return %c0_i32, %c0_i32_0 : i32, i32
  }
  func.func @transform_3(%arg0: i32) -> (i32, i32) {
    %c0_i32 = arith.constant 0 : i32
    %c0_i32_0 = arith.constant 0 : i32
    return %c0_i32, %arg0 : i32, i32
  }
}

</mosaic_0001>

<bundles_post_ra>
// kernel: tpu_custom_call.1
= control target key start
LH: loop header
LB: loop body
LE: loop exit
PB: predicated region body
PF: predicated region fallthrough
CT: control target
= control target key end

     0   :  { %v120_v2 = vmov 0   ;;  %s172_s0 = inlined_call_operand.vmem [shape: f32[26,8], index: 0, kind: input, shape index: {}]   ;;  %s173_s1 = inlined_call_operand.vmem [shape: f32[26,1], index: 1, kind: input, shape index: {}]   ;;  %s174_s2 = inlined_call_operand.<no memory space> [shape: f32[1,1], index: 2, kind: input, shape index: {}]   ;;  %s175_s3 = inlined_call_operand.hbm [shape: f32[1,8], index: 3, kind: output, shape index: {}]  }
   0x1   :  { %v22_v0 = vld [vmem:[%s173_s1 + $0x10] sm:$0xff]  ;;  %v20_v1 = vld [vmem:[%s173_s1] sm:$0xff]  ;;  %91 = vset.pattern.permute.xlu1 %v120_v2  ;;  %90 = vset.pattern.permute.xlu0 %v120_v2 }
   0x2   :  { %9 = vsyncpa [#allocation4], 0  ;;  %37 = vperm.xlu1 %91, %v22_v0   ;;  %27 = vperm.xlu0 %90, %v20_v1   ;;  %v23_v3 = vld [vmem:[%s173_s1 + $0x18] sm:$0x3]  ;;  %v21_v4 = vld [vmem:[%s173_s1 + $0x8] sm:$0xff]  ;;  %vm49_vm0 = vcmask 64512   ;;  %v64_v29 = vstv %s174_s2 }
   0x3   :  { %v16_v7 = vld [vmem:[%s172_s0] sm:$0xff]  ;;  %v18_v8 = vld [vmem:[%s172_s0 + $0x10] sm:$0xff]  ;;  %v17_v9 = vld [vmem:[%s172_s0 + $0x8] sm:$0xff]  ;;  %vm55_vm1 = vcmask 58368   ;;  %s79_s5 = sshll.u32 %s175_s3, 4  ;;  %vm70_vm2 = vcmask 57344   ;;  %s80_s5 = int_to_ptr.hbm [resolvable:$true] %s79_s5 }
   0x4   :  { %v19_v12 = vld [vmem:[%s172_s0 + $0x18] sm:$0x3]  ;;  %s121_s0 = smov [#allocation3]  }
   0x5   :  { %s77_s29 = sshll.u32 %s121_s0, 4  ;;  %s78_s29 = int_to_ptr.vmem [resolvable:$true] %s77_s29 }
   0xa   :  { %42 = vperm.xlu1 %91, %v23_v3   ;;  %32 = vperm.xlu0 %90, %v21_v4  }
  0x74   :  { %v38_v5 = vpop.permute.xlu1 %37  ;;  %v28_v6 = vpop.permute.xlu0 %27 }
  0x75   :  { %v45_v10 = vmul.f32 %v28_v6, %v16_v7  ;;  %v47_v14 = vmul.f32 %v38_v5, %v18_v8 }
  0x77   :  { %v50_v16 = vsel %vm49_vm0, %v45_v10, 0.0  ;;  %v53_v20 = vsel %vm49_vm0, %v47_v14, 0.0 }
  0x7c   :  { %v43_v11 = vpop.permute.xlu1 %42  ;;  %v33_v13 = vpop.permute.xlu0 %32 }
  0x7d   :  { %v46_v15 = vmul.f32 %v33_v13, %v17_v9  ;;  %v48_v17 = vmul.f32 %v43_v11, %v19_v12 }
  0x7f   :  { %v51_v18 = vsel %vm49_vm0, %v46_v15, 0.0  ;;  %v56_v22 = vsel %vm55_vm1, %v48_v17, 0.0 }
  0x80   :  { %v52_v19 = vadd.f32 %v51_v18, %v50_v16 }
  0x82   :  { %v54_v21 = vadd.f32 %v53_v20, %v52_v19 }
  0x84   :  { %v57_v23 = vadd.f32 %v56_v22, %v54_v21 }
  0x86   :  { %v58_v24 = vrot.slane %v57_v23, 4 }
  0x88   :  { %v59_v25 = vadd.f32 %v58_v24, %v57_v23 }
  0x8a   :  { %v60_v26 = vrot.slane %v59_v25, 2 }
  0x8c   :  { %v61_v27 = vadd.f32 %v60_v26, %v59_v25 }
  0x8e   :  { %v62_v28 = vrot.slane %v61_v27, 1 }
  0x90   :  { %v63_v30 = vadd.f32 %v62_v28, %v61_v27 }
  0x92   :  { %v65_v31 = vadd.f32 %v64_v29, %v63_v30 }
  0x94   :  { %v66_v32 = vmul.f32 0.5, %v65_v31 }
  0x96   :  { %92 = vtanh.f32 %v66_v32 }
  0x9c   :  { %v93_v33 = vpop.eup %92 }
  0x9d   :  { %v68_v34 = vadd.f32 1.0, %v93_v33 }
  0x9f   :  { %v69_v35 = vmul.f32 0.5, %v68_v34 }
  0xa1   :  { %71 = vst.msk [vmem:[#allocation3] sm:$0x1] %vm70_vm2, %v69_v35 }
  0xa2   :  { %82 = dma.vmem_to_hbm [thread:$0]  %s78_s29, 16, %s80_s5, [#allocation4]  }
  0xa3   :  { %118 = dma.done.wait [#allocation4], 16  }
  0xa4   :  { %119 = vsyncadd [#allocation4], 4294967280 }
  0xa5   :  { %87 = vsyncpa [#allocation4], 1 }

</bundles_post_ra>
